<compile_context>
chip_gen: v7x
topology: tpu7x:2x2x1
jax: 0.10.0
libtpu: 0.0.40
codegen_flags: <defaults>
</compile_context>

<pallas_src>
import functools

import jax
import jax.numpy as jnp
from jax.experimental import pallas as pl
from jax.experimental.pallas import tpu as pltpu

LANES = 128            # f32 vreg lane width; each instance occupies lanes [0, H) of one row.
DEFAULT_BLOCK_B = 1024  # sublane tile for the batch axis; 512+ ~85% of HBM roofline on v6e,
                        # v7x prefers >=1024.  1024*128*4B = 512 KiB per buffer -> fits every gen.


def _round_up(n, m):
    return ((n + m - 1) // m) * m


def _relu_model_kernel(h, monotone, x_ref, p_ref, o_ref):
    """One batch tile of ReluModel.forward.

    x_ref: (TB, 128) f32 — lanes [0, h) hold x[:h] per instance, rest zero.
    p_ref: (1, 384) f32 — lane blocks [0:128)=element_bias, [128:256)=scales,
                          [256:384)=global bias broadcast (param blocks zero past h).
    o_ref: (TB, 128) f32 — lanes [0, h) hold cumsum(v)+bias (monotone) or v+bias.
    """
    eb = p_ref[:, 0 * LANES:1 * LANES]           # (1, 128) 128-lane-aligned views
    sc = p_ref[:, 1 * LANES:2 * LANES]
    b = p_ref[:, 2 * LANES:3 * LANES]

    v = jnp.maximum(x_ref[...] + eb, 0.0) * sc   # + element_bias, relu, * scales
    if monotone:
        v = jnp.maximum(v, 0.0)                  # monotone relu
        # Mask-free Hillis-Steele inclusive prefix sum along lanes (XLU roll + VPU add).
        # Safe without a lane mask because lanes >= h are zero and h <= 64, so every
        # roll wrap-around only reads lanes that are still zero.
        s = 1
        while s < h:
            v = v + pltpu.roll(v, shift=s, axis=1)
            s *= 2
    o_ref[...] = v + b                           # single unmasked full-tile store


def pack_params(scales, element_bias, bias):
    """Pack (element_bias | scales | bias) into one lane-blocked (1, 384) f32 row.

    Parameters are model constants — pack once and reuse across forward calls.
    """
    h = element_bias.shape[0]
    assert scales.shape[0] == h
    assert h <= 64, "mask-free lane scan requires h <= 64 (tile the scan for larger h)"
    eb = jnp.zeros((LANES,), jnp.float32).at[:h].set(element_bias.astype(jnp.float32))
    sc = jnp.zeros((LANES,), jnp.float32).at[:h].set(scales.astype(jnp.float32))
    bb = jnp.full((LANES,), jnp.asarray(bias, jnp.float32))
    return jnp.concatenate([eb, sc, bb]).reshape(1, 3 * LANES)


def relu_model_forward_batched(xb, params, *, h, monotone, block_b=DEFAULT_BLOCK_B):
    """Batched ReluModel.forward.  xb: (B, N) with N >= h.

    Returns (B, 2*h) if monotone else (B, h)   (== element_size, element_size // 2).
    """
    B = xb.shape[0]
    assert xb.shape[1] >= h, "input must have at least element_size // 2 elements"
    assert h <= 64

    tb = min(block_b, _round_up(B, 8))           # sublane tile (multiple of 8)
    b_pad = _round_up(B, tb)

    # Lane-dense packed input: lanes [0, h) per row hold the instance, rest zero.
    x_p = jnp.zeros((b_pad, LANES), jnp.float32).at[:B, :h].set(
        xb[:, :h].astype(jnp.float32))

    out = pl.pallas_call(
        functools.partial(_relu_model_kernel, h, monotone),
        out_shape=jax.ShapeDtypeStruct((b_pad, LANES), jnp.float32),
        grid_spec=pltpu.PrefetchScalarGridSpec(
            num_scalar_prefetch=0,
            grid=(b_pad // tb,),
            in_specs=[pl.BlockSpec((tb, LANES), lambda i: (i, 0)),
                      pl.BlockSpec((1, 3 * LANES), lambda i: (0, 0))],
            out_specs=pl.BlockSpec((tb, LANES), lambda i: (i, 0)),
        ),
        compiler_params=pltpu.CompilerParams(
            dimension_semantics=("parallel",)),   # batch tiles shard across TCs on v7x
    )(x_p, params)

    cum = out[:B, :h]
    if monotone:
        # cat(cum, flip(cum)); bias is already added (flip(cum+b) == flip(cum)+b).
        return jnp.concatenate([cum, cum[:, ::-1]], axis=-1)
    return cum


def relu_model_forward(x, scales, element_bias, bias, *, monotone):
    """Single-instance forward matching ReluModel.forward(x) exactly.

    NOTE: for the non-monotone path (3 elementwise ops on h elements) a dedicated
    pallas_call is pure launch overhead; in production let XLA fuse it into neighbors.
    It is routed through the same kernel here only to keep one code path.
    """
    h = element_bias.shape[0]
    params = pack_params(scales, element_bias, bias)
    return relu_model_forward_batched(x[None, :], params, h=h, monotone=monotone)[0]


def _reference_forward(x, scales, element_bias, bias, *, monotone):
    h = element_bias.shape[0]
    v = x[..., :h].astype(jnp.float32) + element_bias.astype(jnp.float32)
    v = jnp.maximum(v, 0.0) * scales.astype(jnp.float32)
    if monotone:
        v = jnp.maximum(v, 0.0)
        c = jnp.cumsum(v, axis=-1)
        v = jnp.concatenate([c, c[..., ::-1]], axis=-1)
    return v + jnp.float32(bias)


if __name__ == "__main__":
    element_size = 32                      # module config -> h = 16 parameters
    H = element_size // 2

    # Deterministic parameter values matching ReluModel.__init__ (f32 instead of f64).
    scales = jnp.ones((H,), jnp.float32)                # torch.tensor([1]*H)
    element_bias = jnp.full((H,), 1e-2, jnp.float32)    # torch.tensor([1e-2]*H)
    bias = jnp.float32(1e-5)                            # torch.tensor(1e-5)

    k1, k2 = jax.random.split(jax.random.PRNGKey(0))
    x_single = jax.random.normal(k1, (element_size,), jnp.float32)
    x_batch = jax.random.normal(k2, (64, element_size), jnp.float32)  # 64 instances

    params = pack_params(scales, element_bias, bias)    # packed once, reused per call

    fwd_b = jax.jit(relu_model_forward_batched,
                    static_argnames=("h", "monotone", "block_b"))
    fwd_s = jax.jit(relu_model_forward, static_argnames=("monotone",))

    ok = True
    for monotone in (True, False):
        out_b = jax.block_until_ready(fwd_b(x_batch, params, h=H, monotone=monotone))
        ref_b = _reference_forward(x_batch, scales, element_bias, bias, monotone=monotone)
        ok &= bool(jnp.allclose(out_b, ref_b, rtol=1e-5, atol=1e-5))

        out_s = jax.block_until_ready(
            fwd_s(x_single, scales, element_bias, bias, monotone=monotone))
        ref_s = _reference_forward(x_single, scales, element_bias, bias,
                                   monotone=monotone)
        ok &= bool(jnp.allclose(out_s, ref_s, rtol=1e-5, atol=1e-5))

    if ok:
        print("KERNEL_OK")
</pallas_src>

<mosaic_0001>
module attributes {stable_mosaic.version = 11 : i64} {
  func.func @_relu_model_kernel(%arg0: i32, %arg1: memref<64x128xf32, #tpu.memory_space<vmem>>, %arg2: memref<1x384xf32, #tpu.memory_space<vmem>>, %arg3: memref<64x128xf32, #tpu.memory_space<vmem>>) attributes {dimension_semantics = [#tpu.dimension_semantics<parallel>], iteration_bounds = array<i64: 1>, scalar_prefetch = 0 : i64, scratch_operands = 0 : i64, tpu.core_type = #tpu.core_type<tc>, window_params = [{transform_indices = @transform_0, window_bounds = array<i64: 64, 128>}, {pipeline_mode = #tpu.pipeline_mode<synchronous>, transform_indices = @transform_1, window_bounds = array<i64: 1, 384>}, {transform_indices = @transform_2, window_bounds = array<i64: 64, 128>}]} {
    %c0 = arith.constant 0 : index
    %c0_0 = arith.constant 0 : index
    %0 = vector.load %arg2[%c0, %c0_0] : memref<1x384xf32, #tpu.memory_space<vmem>>, vector<1x128xf32>
    %c0_1 = arith.constant 0 : index
    %c128 = arith.constant 128 : index
    %1 = vector.load %arg2[%c0_1, %c128] : memref<1x384xf32, #tpu.memory_space<vmem>>, vector<1x128xf32>
    %c0_2 = arith.constant 0 : index
    %c256 = arith.constant 256 : index
    %2 = vector.load %arg2[%c0_2, %c256] : memref<1x384xf32, #tpu.memory_space<vmem>>, vector<1x128xf32>
    %c0_3 = arith.constant 0 : index
    %c0_4 = arith.constant 0 : index
    %3 = vector.load %arg1[%c0_3, %c0_4] : memref<64x128xf32, #tpu.memory_space<vmem>>, vector<64x128xf32>
    %4 = vector.broadcast %0 : vector<1x128xf32> to vector<64x128xf32>
    %5 = arith.addf %3, %4 : vector<64x128xf32>
    %cst = arith.constant 0.000000e+00 : f32
    %6 = vector.broadcast %cst : f32 to vector<64x128xf32>
    %7 = arith.maximumf %5, %6 : vector<64x128xf32>
    %8 = vector.broadcast %1 : vector<1x128xf32> to vector<64x128xf32>
    %9 = arith.mulf %7, %8 : vector<64x128xf32>
    %cst_5 = arith.constant 0.000000e+00 : f32
    %10 = vector.broadcast %cst_5 : f32 to vector<64x128xf32>
    %11 = arith.maximumf %9, %10 : vector<64x128xf32>
    %c1_i32 = arith.constant 1 : i32
    %12 = tpu.dynamic_rotate %11 by %c1_i32 dim 1 : vector<64x128xf32>, i32 -> vector<64x128xf32>
    %13 = arith.addf %11, %12 : vector<64x128xf32>
    %c2_i32 = arith.constant 2 : i32
    %14 = tpu.dynamic_rotate %13 by %c2_i32 dim 1 : vector<64x128xf32>, i32 -> vector<64x128xf32>
    %15 = arith.addf %13, %14 : vector<64x128xf32>
    %c4_i32 = arith.constant 4 : i32
    %16 = tpu.dynamic_rotate %15 by %c4_i32 dim 1 : vector<64x128xf32>, i32 -> vector<64x128xf32>
    %17 = arith.addf %15, %16 : vector<64x128xf32>
    %c8_i32 = arith.constant 8 : i32
    %18 = tpu.dynamic_rotate %17 by %c8_i32 dim 1 : vector<64x128xf32>, i32 -> vector<64x128xf32>
    %19 = arith.addf %17, %18 : vector<64x128xf32>
    %20 = vector.broadcast %2 : vector<1x128xf32> to vector<64x128xf32>
    %21 = arith.addf %19, %20 : vector<64x128xf32>
    %c0_6 = arith.constant 0 : index
    %c0_7 = arith.constant 0 : index
    %22 = vector.load %arg3[%c0_6, %c0_7] : memref<64x128xf32, #tpu.memory_space<vmem>>, vector<64x128xf32>
    tpu.vector_store %arg3[%c0_6, %c0_7], %21 {strides = array<i32>} : memref<64x128xf32, #tpu.memory_space<vmem>>, vector<64x128xf32>,
    return
  }
  func.func @transform_0(%arg0: i32) -> (i32, i32) {
    %c0_i32 = arith.constant 0 : i32
    %c0_i32_0 = arith.constant 0 : i32
    return %arg0, %c0_i32 : i32, i32
  }
  func.func @transform_1(%arg0: i32) -> (i32, i32) {
    %c0_i32 = arith.constant 0 : i32
    %c0_i32_0 = arith.constant 0 : i32
    %c0_i32_1 = arith.constant 0 : i32
    return %c0_i32, %c0_i32_0 : i32, i32
  }
  func.func @transform_2(%arg0: i32) -> (i32, i32) {
    %c0_i32 = arith.constant 0 : i32
    %c0_i32_0 = arith.constant 0 : i32
    return %arg0, %c0_i32 : i32, i32
  }
}

</mosaic_0001>

<bundles_post_ra>
// kernel: relu_model_forward_batched.1
= control target key start
LH: loop header
LB: loop body
LE: loop exit
PB: predicated region body
PF: predicated region fallthrough
CT: control target
= control target key end

     0   :  { %s195_s29 = smov 1   ;;  %s197_s30 = smov 4   ;;  %s271_s0 = inlined_call_operand.vmem [shape: f32[64,128], index: 0, kind: input, shape index: {}]   ;;  %s272_s1 = inlined_call_operand.vmem [shape: f32[1,384], index: 1, kind: input, shape index: {}]   ;;  %s273_s2 = inlined_call_operand.vmem [shape: f32[64,128], index: 2, kind: output, shape index: {}]  }
   0x1   :  { %v188_v0 = vld [vmem:[%s272_s1] ss:$0 sm:$0xff]  ;;  %v189_v1 = vld [vmem:[%s272_s1 + $0x1] ss:$0 sm:$0xff]  ;;  %v16_v4 = vld [vmem:[%s271_s0 + $0x10] sm:$0xff]  ;;  %s198_s3 = smov 8  }
   0x2   :  { %v14_v2 = vld [vmem:[%s271_s0] sm:$0xff]  ;;  %v15_v5 = vld [vmem:[%s271_s0 + $0x8] sm:$0xff]  ;;  %v17_v6 = vld [vmem:[%s271_s0 + $0x18] sm:$0xff]  ;;  %v30_v7 = vadd.f32 %v188_v0, %v16_v4 }
   0x3   :  { %v28_v3 = vadd.f32 %v188_v0, %v14_v2  ;;  %v29_v8 = vadd.f32 %v188_v0, %v15_v5  ;;  %v31_v9 = vadd.f32 %v188_v0, %v17_v6  ;;  %v18_v10 = vld [vmem:[%s271_s0 + $0x20] sm:$0xff]  ;;  %v19_v11 = vld [vmem:[%s271_s0 + $0x28] sm:$0xff]  ;;  %v20_v12 = vld [vmem:[%s271_s0 + $0x30] sm:$0xff] }
   0x4   :  { %v32_v14 = vadd.f32 %v188_v0, %v18_v10  ;;  %v33_v15 = vadd.f32 %v188_v0, %v19_v11  ;;  %v21_v16 = vld [vmem:[%s271_s0 + $0x38] sm:$0xff]  ;;  %v38_v17 = vmax.f32 %v30_v7, 0.0  ;;  %v34_v22 = vadd.f32 %v188_v0, %v20_v12  ;;  %s196_s0 = smov 2  }
   0x5   :  { %v36_v13 = vmax.f32 %v28_v3, 0.0  ;;  %v37_v18 = vmax.f32 %v29_v8, 0.0  ;;  %v39_v19 = vmax.f32 %v31_v9, 0.0  ;;  %v35_v23 = vadd.f32 %v188_v0, %v21_v16 }
   0x6   :  { %v40_v21 = vmax.f32 %v32_v14, 0.0  ;;  %v52_v24 = vmul.f32 %v189_v1, %v38_v17  ;;  %v41_v27 = vmax.f32 %v33_v15, 0.0  ;;  %v42_v32 = vmax.f32 %v34_v22, 0.0 }
   0x7   :  { %v50_v20 = vmul.f32 %v189_v1, %v36_v13  ;;  %v51_v25 = vmul.f32 %v189_v1, %v37_v18  ;;  %v53_v26 = vmul.f32 %v189_v1, %v39_v19  ;;  %v43_v35 = vmax.f32 %v35_v23, 0.0 }
   0x8   :  { %v60_v29 = vmax.f32 %v52_v24, 0.0  ;;  %v54_v31 = vmul.f32 %v189_v1, %v40_v21  ;;  %v55_v34 = vmul.f32 %v189_v1, %v41_v27  ;;  %v56_v37 = vmul.f32 %v189_v1, %v42_v32 }
   0x9   :  { %v58_v28 = vmax.f32 %v50_v20, 0.0  ;;  %v59_v30 = vmax.f32 %v51_v25, 0.0  ;;  %v61_v33 = vmax.f32 %v53_v26, 0.0  ;;  %v57_v39 = vmul.f32 %v189_v1, %v43_v35  ;;  %v190_v26 = vld [vmem:[%s272_s1 + $0x2] ss:$0 sm:$0xff] }
   0xa   :  { %70 = vrot.lane.b32.xlu1 %v60_v29, %s195_s29  ;;  %v62_v36 = vmax.f32 %v54_v31, 0.0  ;;  %v63_v38 = vmax.f32 %v55_v34, 0.0  ;;  %v64_v40 = vmax.f32 %v56_v37, 0.0 }
   0xb   :  { %66 = vrot.lane.b32.xlu0 %v58_v28, %s195_s29  ;;  %v65_v41 = vmax.f32 %v57_v39, 0.0 }
   0xe   :  { %72 = vrot.lane.b32.xlu1 %v61_v33, %s195_s29 }
   0xf   :  { %68 = vrot.lane.b32.xlu0 %v59_v30, %s195_s29 }
  0x12   :  { %76 = vrot.lane.b32.xlu1 %v63_v38, %s195_s29 }
  0x13   :  { %74 = vrot.lane.b32.xlu0 %v62_v36, %s195_s29 }
  0x16   :  { %80 = vrot.lane.b32.xlu1 %v65_v41, %s195_s29 }
  0x17   :  { %78 = vrot.lane.b32.xlu0 %v64_v40, %s195_s29 }
  0x7c   :  { %v71_v44 = vpop.permute.xlu1 %70 }
  0x7d   :  { %v67_v42 = vpop.permute.xlu0 %66  ;;  %v84_v45 = vadd.f32 %v71_v44, %v60_v29 }
  0x7e   :  { %v82_v43 = vadd.f32 %v67_v42, %v58_v28 }
  0x80   :  { %90 = vrot.lane.b32.xlu0 %v82_v43, %s196_s0  ;;  %v73_v48 = vpop.permute.xlu1 %72 }
  0x81   :  { %v69_v46 = vpop.permute.xlu0 %68  ;;  %v85_v49 = vadd.f32 %v73_v48, %v61_v33 }
  0x82   :  { %v83_v47 = vadd.f32 %v69_v46, %v59_v30 }
  0x84   :  { %94 = vrot.lane.b32.xlu0 %v84_v45, %s196_s0  ;;  %92 = vrot.lane.b32.xlu1 %v83_v47, %s196_s0  ;;  %v77_v52 = vpop.permute.xlu1 %76 }
  0x85   :  { %v75_v50 = vpop.permute.xlu0 %74  ;;  %v87_v53 = vadd.f32 %v77_v52, %v63_v38 }
  0x86   :  { %v86_v51 = vadd.f32 %v75_v50, %v62_v36 }
  0x88   :  { %96 = vrot.lane.b32.xlu1 %v85_v49, %s196_s0  ;;  %98 = vrot.lane.b32.xlu0 %v86_v51, %s196_s0  ;;  %v81_v56 = vpop.permute.xlu1 %80 }
  0x89   :  { %v79_v54 = vpop.permute.xlu0 %78  ;;  %v89_v57 = vadd.f32 %v81_v56, %v65_v41 }
  0x8a   :  { %v88_v55 = vadd.f32 %v79_v54, %v64_v40 }
  0x8c   :  { %100 = vrot.lane.b32.xlu1 %v87_v53, %s196_s0  ;;  %102 = vrot.lane.b32.xlu0 %v88_v55, %s196_s0 }
  0x90   :  { %104 = vrot.lane.b32.xlu1 %v89_v57, %s196_s0 }
  0xf2   :  { %v91_v58 = vpop.permute.xlu0 %90 }
  0xf3   :  { %v106_v59 = vadd.f32 %v91_v58, %v82_v43 }
  0xf5   :  { %114 = vrot.lane.b32.xlu0 %v106_v59, %s197_s30 }
  0xf6   :  { %v93_v60 = vpop.permute.xlu1 %92  ;;  %v95_v61 = vpop.permute.xlu0 %94 }
  0xf7   :  { %v107_v62 = vadd.f32 %v93_v60, %v83_v47  ;;  %v108_v63 = vadd.f32 %v95_v61, %v84_v45 }
  0xf9   :  { %116 = vrot.lane.b32.xlu1 %v107_v62, %s197_s30  ;;  %118 = vrot.lane.b32.xlu0 %v108_v63, %s197_s30 }
  0xfa   :  { %v97_v0 = vpop.permute.xlu1 %96  ;;  %v99_v1 = vpop.permute.xlu0 %98 }
  0xfb   :  { %v109_v2 = vadd.f32 %v97_v0, %v85_v49  ;;  %v110_v3 = vadd.f32 %v99_v1, %v86_v51 }
  0xfd   :  { %120 = vrot.lane.b32.xlu1 %v109_v2, %s197_s30  ;;  %122 = vrot.lane.b32.xlu0 %v110_v3, %s197_s30 }
  0xfe   :  { %v101_v4 = vpop.permute.xlu1 %100  ;;  %v103_v5 = vpop.permute.xlu0 %102 }
  0xff   :  { %v111_v6 = vadd.f32 %v101_v4, %v87_v53  ;;  %v112_v7 = vadd.f32 %v103_v5, %v88_v55 }
 0x101   :  { %124 = vrot.lane.b32.xlu1 %v111_v6, %s197_s30  ;;  %126 = vrot.lane.b32.xlu0 %v112_v7, %s197_s30 }
 0x102   :  { %v105_v8 = vpop.permute.xlu1 %104 }
 0x103   :  { %v113_v9 = vadd.f32 %v105_v8, %v89_v57 }
 0x105   :  { %128 = vrot.lane.b32.xlu1 %v113_v9, %s197_s30 }
 0x167   :  { %v115_v10 = vpop.permute.xlu0 %114 }
 0x168   :  { %v130_v11 = vadd.f32 %v115_v10, %v106_v59 }
 0x16a   :  { %138 = vrot.lane.b32.xlu0 %v130_v11, %s198_s3 }
 0x16b   :  { %v117_v12 = vpop.permute.xlu1 %116  ;;  %v119_v13 = vpop.permute.xlu0 %118 }
 0x16c   :  { %v131_v14 = vadd.f32 %v117_v12, %v107_v62  ;;  %v132_v15 = vadd.f32 %v119_v13, %v108_v63 }
 0x16e   :  { %140 = vrot.lane.b32.xlu1 %v131_v14, %s198_s3  ;;  %142 = vrot.lane.b32.xlu0 %v132_v15, %s198_s3 }
 0x16f   :  { %v121_v16 = vpop.permute.xlu1 %120  ;;  %v123_v17 = vpop.permute.xlu0 %122 }
 0x170   :  { %v133_v18 = vadd.f32 %v121_v16, %v109_v2  ;;  %v134_v19 = vadd.f32 %v123_v17, %v110_v3 }
 0x172   :  { %144 = vrot.lane.b32.xlu1 %v133_v18, %s198_s3  ;;  %146 = vrot.lane.b32.xlu0 %v134_v19, %s198_s3 }
 0x173   :  { %v125_v20 = vpop.permute.xlu1 %124  ;;  %v127_v21 = vpop.permute.xlu0 %126 }
 0x174   :  { %v135_v22 = vadd.f32 %v125_v20, %v111_v6  ;;  %v136_v23 = vadd.f32 %v127_v21, %v112_v7 }
 0x176   :  { %148 = vrot.lane.b32.xlu1 %v135_v22, %s198_s3  ;;  %150 = vrot.lane.b32.xlu0 %v136_v23, %s198_s3 }
 0x177   :  { %v129_v24 = vpop.permute.xlu1 %128 }
 0x178   :  { %v137_v25 = vadd.f32 %v129_v24, %v113_v9 }
 0x17a   :  { %152 = vrot.lane.b32.xlu1 %v137_v25, %s198_s3 }
 0x1dc   :  { %v139_v27 = vpop.permute.xlu0 %138 }
 0x1dd   :  { %v154_v28 = vadd.f32 %v139_v27, %v130_v11 }
 0x1df   :  { %v168_v29 = vadd.f32 %v190_v26, %v154_v28 }
 0x1e0   :  { %v141_v30 = vpop.permute.xlu1 %140  ;;  %v143_v31 = vpop.permute.xlu0 %142 }
 0x1e1   :  { %176 = vst [vmem:[%s273_s2] sm:$0xff] %v168_v29  ;;  %v155_v32 = vadd.f32 %v141_v30, %v131_v14  ;;  %v156_v33 = vadd.f32 %v143_v31, %v132_v15 }
 0x1e3   :  { %v169_v34 = vadd.f32 %v190_v26, %v155_v32  ;;  %v170_v35 = vadd.f32 %v190_v26, %v156_v33 }
 0x1e4   :  { %v145_v36 = vpop.permute.xlu1 %144  ;;  %v147_v37 = vpop.permute.xlu0 %146 }
 0x1e5   :  { %177 = vst [vmem:[%s273_s2 + $0x8] sm:$0xff] %v169_v34  ;;  %178 = vst [vmem:[%s273_s2 + $0x10] sm:$0xff] %v170_v35  ;;  %v157_v38 = vadd.f32 %v145_v36, %v133_v18  ;;  %v158_v39 = vadd.f32 %v147_v37, %v134_v19 }
 0x1e7   :  { %v171_v40 = vadd.f32 %v190_v26, %v157_v38  ;;  %v172_v41 = vadd.f32 %v190_v26, %v158_v39 }
 0x1e8   :  { %v149_v42 = vpop.permute.xlu1 %148  ;;  %v151_v43 = vpop.permute.xlu0 %150 }
 0x1e9   :  { %179 = vst [vmem:[%s273_s2 + $0x18] sm:$0xff] %v171_v40  ;;  %180 = vst [vmem:[%s273_s2 + $0x20] sm:$0xff] %v172_v41  ;;  %v159_v44 = vadd.f32 %v149_v42, %v135_v22  ;;  %v160_v45 = vadd.f32 %v151_v43, %v136_v23 }
 0x1eb   :  { %v173_v46 = vadd.f32 %v190_v26, %v159_v44  ;;  %v174_v47 = vadd.f32 %v190_v26, %v160_v45 }
 0x1ec   :  { %v153_v48 = vpop.permute.xlu1 %152 }
 0x1ed   :  { %181 = vst [vmem:[%s273_s2 + $0x28] sm:$0xff] %v173_v46  ;;  %182 = vst [vmem:[%s273_s2 + $0x30] sm:$0xff] %v174_v47  ;;  %v161_v49 = vadd.f32 %v153_v48, %v137_v25 }
 0x1ef   :  { %v175_v50 = vadd.f32 %v190_v26, %v161_v49 }
 0x1f1   :  { %183 = vst [vmem:[%s273_s2 + $0x38] sm:$0xff] %v175_v50 }

</bundles_post_ra>
